<compile_context>
chip_gen: v7x
topology: tpu7x:2x2x1
jax: 0.10.0
libtpu: 0.0.40
codegen_flags: <defaults>
</compile_context>

<pallas_src>
import functools

import jax
import jax.numpy as jnp
from jax.experimental import pallas as pl
from jax.experimental.pallas import tpu as pltpu


def _embedding_kernel(ids_ref, w_ref, out_ref, *, precision):
    # ids_ref : VMEM (tile, 1) int32  -- token ids for this tile (column vector)
    # w_ref   : VMEM (V, D_pad)       -- full embedding table (small-vocab resident path)
    # out_ref : VMEM (tile, D_pad)    -- gathered embedding rows
    tile = out_ref.shape[0]
    V = w_ref.shape[0]

    # Defensive clamp done in-kernel (free VALU op, hidden under the matmul/DMA);
    # PyTorch would raise on OOB ids, here we clamp so no adjacent/stale memory is read.
    ids = jnp.clip(ids_ref[...], 0, V - 1)                        # (tile, 1)
    col = jax.lax.broadcasted_iota(jnp.int32, (tile, V), 1)       # (tile, V)
    one_hot = (col == ids).astype(w_ref.dtype)                    # (tile, V)

    # (tile, V) @ (V, D) on the MXU. For f32 tables `precision` is HIGHEST so the
    # selected row is reproduced exactly; bf16 tables are exact at default precision.
    # NOTE: for small D (<~256) this kernel is VALU-bound, not MXU-bound; keep the
    # compare+cast as the only elementwise work per step.
    out_ref[...] = jnp.dot(
        one_hot,
        w_ref[...],
        preferred_element_type=jnp.float32,
        precision=precision,
    ).astype(out_ref.dtype)


def _round_up(x, m):
    return (x + m - 1) // m * m


def _pick_tile(n, d_pad, itemsize, max_tile):
    """Pick the token-tile size.

    Prefers (a) large tiles (amortise ~0.35us/step pipeline overhead), (b) tiles that
    divide `n` exactly (avoids an extra pad-then-slice pass over the output), (c) each
    output buffer <= ~2 MiB so double-buffered blocks stay cheap in VMEM.
    Returns (tile, n_padded).
    """
    bytes_per_row = max(d_pad * itemsize, 1)
    cap = min(max_tile, max(8, (2 * 1024 * 1024) // bytes_per_row))
    candidates = (1024, 512, 256, 128, 64, 32, 16, 8)
    tcap = next((t for t in candidates if t <= cap), 8)

    # Exact divisor of n, but never more than 4x smaller than the cap.
    for t in candidates:
        if t <= tcap and t * 4 >= tcap and n % t == 0:
            return t, n

    # Ragged: pad ids to a tile multiple (pad id 0) and slice the output afterwards.
    tile = min(tcap, _round_up(n, 8))
    return tile, _round_up(n, tile)


def embedding_lookup(token_ids, weight, *, max_tile=512):
    """Equivalent of `weight[token_ids]` (forward of nn.Embedding) for any-rank token_ids.

    max_tile: token rows processed per grid step. 512 is safe on all generations
    (v7x has only 64 MiB VMEM per TC); 1024 is a good choice on v5e/v6e when VMEM allows.
    """
    if weight.ndim != 2:
        raise ValueError("weight must have shape (num_embeddings, embedding_dim)")
    wdt = jnp.dtype(weight.dtype)
    if wdt not in (jnp.dtype(jnp.float32), jnp.dtype(jnp.bfloat16)):
        # TODO(synk): int8/fp8 tables need a true gather path (one-hot matmul is invalid
        # for integer dtypes and v7x MXU has no int support).
        raise NotImplementedError("embedding_lookup supports float32 / bfloat16 tables")

    V, D = weight.shape
    lead_shape = token_ids.shape
    N = 1
    for s in lead_shape:
        N *= int(s)
    itemsize = wdt.itemsize

    # Keep the output last dim lane-dense (multiple of 128): pad D in the table, slice
    # the padding off after the call. No-op when D % 128 == 0 (the common case).
    D_pad = _round_up(D, 128)
    w = weight if D_pad == D else jnp.pad(weight, ((0, 0), (0, D_pad - D)))

    tile, N_pad = _pick_tile(N, D_pad, itemsize, max_tile)
    num_tiles = N_pad // tile

    ids_flat = token_ids.reshape(N).astype(jnp.int32)
    if N_pad != N:
        ids_flat = jnp.pad(ids_flat, (0, N_pad - N))   # pad id 0; rows sliced off below
    ids_2d = ids_flat.reshape(N_pad, 1)                # (N_pad, 1): tile rows on sublanes

    precision = (
        jax.lax.Precision.HIGHEST if wdt == jnp.dtype(jnp.float32)
        else jax.lax.Precision.DEFAULT
    )
    kernel = functools.partial(_embedding_kernel, precision=precision)

    # VMEM budget: table (single-buffered) + double-buffered (tile, D_pad) output blocks
    # + double-buffered id blocks (lane-padded to 128 words) + compiler headroom.
    table_bytes = V * D_pad * itemsize
    vmem_bytes = (
        table_bytes
        + 2 * tile * D_pad * itemsize
        + 2 * tile * 128 * 4
        + (4 << 20)
    )
    try:
        phys_vmem = int(pltpu.get_tpu_info().vmem_capacity_bytes)
    except Exception:
        phys_vmem = 64 << 20  # v7x per-TC VMEM, the smallest across v5e/v6e/v7x
    vmem_limit = int(max(32 << 20, min(vmem_bytes, phys_vmem)))
    # TODO(synk): when table_bytes approaches phys_vmem, dispatch to the HBM DMA-gather
    # path instead of keeping the whole (V, D) table resident.

    def _call(single_buffer_weight):
        if single_buffer_weight:
            # Constant index_map -> the second pipeline buffer is waste; single-buffer it.
            w_spec = pl.BlockSpec(
                (V, D_pad), lambda i: (0, 0), pipeline_mode=pl.Buffered(1)
            )
        else:
            w_spec = pl.BlockSpec((V, D_pad), lambda i: (0, 0))
        return pl.pallas_call(
            kernel,
            out_shape=jax.ShapeDtypeStruct((N_pad, D_pad), weight.dtype),
            grid_spec=pltpu.PrefetchScalarGridSpec(
                num_scalar_prefetch=0,
                grid=(num_tiles,),
                in_specs=[
                    pl.BlockSpec((tile, 1), lambda i: (i, 0)),  # per-tile token ids
                    w_spec,                                     # resident embedding table
                ],
                out_specs=pl.BlockSpec((tile, D_pad), lambda i: (i, 0)),
            ),
            compiler_params=pltpu.CompilerParams(
                dimension_semantics=("parallel",),  # independent tiles -> v7x 2-TC sharding
                vmem_limit_bytes=vmem_limit,
            ),
        )(ids_2d, w)

    try:
        out_flat = _call(True)
    except Exception:
        # pipeline_mode=pl.Buffered(1) not supported by this jax version: fall back to the
        # default (double-buffered) weight spec -- correct, slightly more VMEM-hungry.
        out_flat = _call(False)

    if N_pad != N:
        out_flat = out_flat[:N]
    if D_pad != D:
        out_flat = out_flat[:, :D]
    return out_flat.reshape(*lead_shape, D)


def init_embedding_weight(key, num_embeddings, embedding_dim, dtype=jnp.float32):
    # Matches init.trunc_normal_(mean=0, std=1, a=-3, b=3): standard normal truncated to [-3, 3].
    return jax.random.truncated_normal(
        key, -3.0, 3.0, (num_embeddings, embedding_dim)
    ).astype(dtype)


if __name__ == "__main__":
    num_embeddings = 32   # vocab size
    embedding_dim = 128   # d_model
    batch, seq = 2, 8

    key = jax.random.PRNGKey(0)
    k_w, k_ids = jax.random.split(key)

    weight = init_embedding_weight(k_w, num_embeddings, embedding_dim)
    token_ids = jax.random.randint(
        k_ids, (batch, seq), 0, num_embeddings, dtype=jnp.int32
    )

    out = embedding_lookup(token_ids, weight)
    out = jax.block_until_ready(out)

    # Reference check (plain JAX gather == PyTorch weight[token_ids]).
    ref = weight[token_ids]
    assert out.shape == (batch, seq, embedding_dim)
    assert out.dtype == weight.dtype
    assert jnp.allclose(out, ref), "Pallas embedding lookup mismatch vs reference gather"

    print("KERNEL_OK")
</pallas_src>

<mosaic_0001>
module attributes {stable_mosaic.version = 11 : i64} {
  func.func @_embedding_kernel(%arg0: i32, %arg1: memref<16x1xi32, #tpu.memory_space<vmem>>, %arg2: memref<32x128xf32, #tpu.memory_space<vmem>>, %arg3: memref<16x128xf32, #tpu.memory_space<vmem>>) attributes {dimension_semantics = [#tpu.dimension_semantics<parallel>], iteration_bounds = array<i64: 1>, scalar_prefetch = 0 : i64, scratch_operands = 0 : i64, tpu.core_type = #tpu.core_type<tc>, window_params = [{transform_indices = @transform_0, window_bounds = array<i64: 16, 1>}, {pipeline_mode = #tpu.pipeline_mode<synchronous>, transform_indices = @transform_1, window_bounds = array<i64: 32, 128>}, {transform_indices = @transform_2, window_bounds = array<i64: 16, 128>}]} {
    %c0 = arith.constant 0 : index
    %c0_0 = arith.constant 0 : index
    %0 = vector.load %arg1[%c0, %c0_0] : memref<16x1xi32, #tpu.memory_space<vmem>>, vector<16x1xi32>
    %c0_i32 = arith.constant 0 : i32
    %c31_i32 = arith.constant 31 : i32
    %1 = vector.broadcast %c0_i32 : i32 to vector<16x1xi32>
    %2 = arith.maxsi %1, %0 : vector<16x1xi32>
    %3 = vector.broadcast %c31_i32 : i32 to vector<16x1xi32>
    %4 = arith.minsi %3, %2 : vector<16x1xi32>
    %5 = tpu.iota {dimensions = array<i32: 1>} : vector<16x32xi32>
    %6 = vector.broadcast %4 : vector<16x1xi32> to vector<16x32xi32>
    %7 = arith.cmpi eq, %5, %6 : vector<16x32xi32>
    %8 = arith.extui %7 : vector<16x32xi1> to vector<16x32xi32>
    %9 = arith.sitofp %8 : vector<16x32xi32> to vector<16x32xf32>
    %c0_1 = arith.constant 0 : index
    %c0_2 = arith.constant 0 : index
    %10 = vector.load %arg2[%c0_1, %c0_2] : memref<32x128xf32, #tpu.memory_space<vmem>>, vector<32x128xf32>
    %cst = arith.constant dense<0.000000e+00> : vector<16x128xf32>
    %11 = tpu.matmul %9, %10, %cst {dimension_numbers = #tpu.dot_dimension_numbers<[1], [0], [0], [1], [0, 0, 1, 1], [], []>, precision = #tpu.contract_precision<fp32>} : vector<16x32xf32>, vector<32x128xf32>, vector<16x128xf32> -> vector<16x128xf32>
    %c0_3 = arith.constant 0 : index
    %c0_4 = arith.constant 0 : index
    %12 = vector.load %arg3[%c0_3, %c0_4] : memref<16x128xf32, #tpu.memory_space<vmem>>, vector<16x128xf32>
    tpu.vector_store %arg3[%c0_3, %c0_4], %11 {strides = array<i32>} : memref<16x128xf32, #tpu.memory_space<vmem>>, vector<16x128xf32>,
    return
  }
  func.func @transform_0(%arg0: i32) -> (i32, i32) {
    %c0_i32 = arith.constant 0 : i32
    %c0_i32_0 = arith.constant 0 : i32
    return %arg0, %c0_i32 : i32, i32
  }
  func.func @transform_1(%arg0: i32) -> (i32, i32) {
    %c0_i32 = arith.constant 0 : i32
    %c0_i32_0 = arith.constant 0 : i32
    %c0_i32_1 = arith.constant 0 : i32
    return %c0_i32, %c0_i32_0 : i32, i32
  }
  func.func @transform_2(%arg0: i32) -> (i32, i32) {
    %c0_i32 = arith.constant 0 : i32
    %c0_i32_0 = arith.constant 0 : i32
    return %arg0, %c0_i32 : i32, i32
  }
}

module attributes {stable_mosaic.version = 11 : i64} {
  func.func @_embedding_kernel(%arg0: i32, %arg1: memref<16x1xi32, #tpu.memory_space<vmem>>, %arg2: memref<32x128xf32, #tpu.memory_space<vmem>>, %arg3: memref<16x128xf32, #tpu.memory_space<vmem>>) attributes {dimension_semantics = [#tpu.dimension_semantics<parallel>], iteration_bounds = array<i64: 1>, scalar_prefetch = 0 : i64, scratch_operands = 0 : i64, tpu.core_type = #tpu.core_type<tc>, window_params = [{transform_indices = @transform_0, window_bounds = array<i64: 16, 1>}, {pipeline_mode = #tpu.pipeline_mode<synchronous>, transform_indices = @transform_1, window_bounds = array<i64: 32, 128>}, {transform_indices = @transform_2, window_bounds = array<i64: 16, 128>}]} {
    %c0 = arith.constant 0 : index
    %c0_0 = arith.constant 0 : index
    %0 = vector.load %arg1[%c0, %c0_0] : memref<16x1xi32, #tpu.memory_space<vmem>>, vector<16x1xi32>
    %c0_i32 = arith.constant 0 : i32
    %c31_i32 = arith.constant 31 : i32
    %1 = vector.broadcast %c0_i32 : i32 to vector<16x1xi32>
    %2 = arith.maxsi %1, %0 : vector<16x1xi32>
    %3 = vector.broadcast %c31_i32 : i32 to vector<16x1xi32>
    %4 = arith.minsi %3, %2 : vector<16x1xi32>
    %5 = tpu.iota {dimensions = array<i32: 1>} : vector<16x32xi32>
    %6 = vector.broadcast %4 : vector<16x1xi32> to vector<16x32xi32>
    %7 = arith.cmpi eq, %5, %6 : vector<16x32xi32>
    %8 = arith.extui %7 : vector<16x32xi1> to vector<16x32xi32>
    %9 = arith.sitofp %8 : vector<16x32xi32> to vector<16x32xf32>
    %c0_1 = arith.constant 0 : index
    %c0_2 = arith.constant 0 : index
    %10 = vector.load %arg2[%c0_1, %c0_2] : memref<32x128xf32, #tpu.memory_space<vmem>>, vector<32x128xf32>
    %cst = arith.constant dense<0.000000e+00> : vector<16x128xf32>
    %11 = tpu.matmul %9, %10, %cst {dimension_numbers = #tpu.dot_dimension_numbers<[1], [0], [0], [1], [0, 0, 1, 1], [], []>, precision = #tpu.contract_precision<fp32>} : vector<16x32xf32>, vector<32x128xf32>, vector<16x128xf32> -> vector<16x128xf32>
    %c0_3 = arith.constant 0 : index
    %c0_4 = arith.constant 0 : index
    %12 = vector.load %arg3[%c0_3, %c0_4] : memref<16x128xf32, #tpu.memory_space<vmem>>, vector<16x128xf32>
    tpu.vector_store %arg3[%c0_3, %c0_4], %11 {strides = array<i32>} : memref<16x128xf32, #tpu.memory_space<vmem>>, vector<16x128xf32>,
    return
  }
  func.func @transform_0(%arg0: i32) -> (i32, i32) {
    %c0_i32 = arith.constant 0 : i32
    %c0_i32_0 = arith.constant 0 : i32
    return %arg0, %c0_i32 : i32, i32
  }
  func.func @transform_1(%arg0: i32) -> (i32, i32) {
    %c0_i32 = arith.constant 0 : i32
    %c0_i32_0 = arith.constant 0 : i32
    %c0_i32_1 = arith.constant 0 : i32
    return %c0_i32, %c0_i32_0 : i32, i32
  }
  func.func @transform_2(%arg0: i32) -> (i32, i32) {
    %c0_i32 = arith.constant 0 : i32
    %c0_i32_0 = arith.constant 0 : i32
    return %arg0, %c0_i32 : i32, i32
  }
}

</mosaic_0001>

<bundles_post_ra>
// kernel: tpu_custom_call.1
= control target key start
LH: loop header
LB: loop body
LE: loop exit
PB: predicated region body
PF: predicated region fallthrough
CT: control target
= control target key end

     0   :  { %7 = vsyncpa [#allocation3], 0  ;;  %s912_s0 = inlined_call_operand.vmem [shape: s32[16,1], index: 0, kind: input, shape index: {}]   ;;  %s913_s1 = inlined_call_operand.hbm [shape: f32[32,128], index: 1, kind: input, shape index: {}]   ;;  %s914_s2 = inlined_call_operand.hbm [shape: f32[16,128], index: 2, kind: output, shape index: {}]  }
   0x1   :  { %8 = vsyncpa [#allocation4], 0  ;;  %s831_s9 = smov [#allocation2]   ;;  %s783_s13 = scalar_lea.hbm %s913_s1, 512 }
   0x2   :  { %s16_s10 = sshll.u32 %s831_s9, 4  ;;  %p784_p0 = scmp.ne.s32.totalorder %s913_s1, %s783_s13  ;;  %s17_s10 = int_to_ptr.vmem [resolvable:$true] %s16_s10 }
   0x3   :  { %p787_p1 = scmp.lt.u32.totalorder %s783_s13, %s913_s1 }
   0x5   :  { %p789_p2 = pnand %p787_p1, %p784_p0 }
   0x7   :  { %792 = shalt.err (!%p789_p2)
}
   0x8   :  { %s793_s18 = scalar_lea.vmem %s17_s10, 512  ;;  %p798_p4 = scmp.lt.s32.totalorder %s17_s10, %s17_s10 }
   0x9   :  { %p794_p3 = scmp.ne.s32.totalorder %s17_s10, %s793_s18  ;;  %p799_p5 = scmp.lt.s32.totalorder %s793_s18, %s793_s18 }
   0xb   :  { %p800_p6 = por %p799_p5, %p798_p4 }
   0xd   :  { %p801_p7 = pnand %p800_p6, %p794_p3 }
   0xf   :  { %804 = shalt.err (!%p801_p7)
}
  0x10   :  { %s832_s19 = smov 128   ;;  %s833_s20 = smov 8  }
  0x11   :  { %22 = dma.hbm_to_vmem [thread:$0]  %s913_s1, 512, %s17_s10, [#allocation3], %s832_s19, %s832_s19, %s833_s20  }
  0x12   :  { %827 = dma.done.wait [#allocation3], 512  }
  0x13   :  { %828 = vsyncadd [#allocation3], 4294966784  ;;  %v834_v0 = vmov 0   ;;  %v26_v1 = vld [vmem:[%s912_s0] sm:$0xff]  ;;  %v27_v2 = vld [vmem:[%s912_s0 + $0x8] sm:$0xff]  ;;  %v36_v39 = vlaneseq  ;;  %vm54_vm4 = vcmask 261120  }
  0x14   :  { %782 = vset.pattern.permute.xlu0 %v834_v0  ;;  %vm28_vm0 = vcmp.gt.s32.totalorder %v26_v1, 0  ;;  %vm30_vm1 = vcmp.gt.s32.totalorder %v27_v2, 0  ;;  %v50_v5 = vld [vmem:[#allocation2] sm:$0xff]  ;;  %v51_v6 = vld [vmem:[#allocation2 + $0x8] sm:$0xff]  ;;  %v52_v12 = vld [vmem:[#allocation2 + $0x10] sm:$0xff]  ;;  %v835_v42 = vmov 0.0  }
  0x15   :  { %v29_v3 = vsel %vm28_vm0, %v26_v1, 0  ;;  %v31_v4 = vsel %vm30_vm1, %v27_v2, 0  ;;  %v62_v8 = vand.u32 4294901760, %v50_v5  ;;  %v65_v9 = vand.u32 4294901760, %v51_v6  ;;  %v53_v13 = vld [vmem:[#allocation2 + $0x18] sm:$0xff]  ;;  %s836_s0 = smov [#allocation5]  }
  0x16   :  { %vm32_vm2 = vcmp.lt.s32.totalorder %v29_v3, 31  ;;  %vm34_vm3 = vcmp.lt.s32.totalorder %v31_v4, 31  ;;  %v68_v14 = vand.u32 4294901760, %v52_v12  ;;  %v71_v15 = vand.u32 4294901760, %v53_v13  ;;  %s596_s1 = sshll.u32 %s836_s0, 4  ;;  %s597_s1 = int_to_ptr.vmem [resolvable:$true] %s596_s1 }
  0x17   :  { %v33_v7 = vsel %vm32_vm2, %v29_v3, 31  ;;  %v35_v10 = vsel %vm34_vm3, %v31_v4, 31  ;;  %v873_v11 = vpack.c.bf16 %v65_v9, %v62_v8  ;;  %v152_v17 = vsub.f32 %v50_v5, %v62_v8  ;;  %s805_s27 = scalar_lea.vmem %s597_s1, 256  ;;  %p810_p9 = scmp.lt.s32.totalorder %s597_s1, %s597_s1 }
  0x18   :  { %39 = vperm.xlu0 %782, %v33_v7   ;;  %v879_v16 = vpack.c.bf16 %v71_v15, %v68_v14  ;;  %v159_v18 = vsub.f32 %v51_v6, %v65_v9  ;;  %v166_v24 = vsub.f32 %v52_v12, %v68_v14  ;;  %v173_v25 = vsub.f32 %v53_v13, %v71_v15  ;;  %p806_p8 = scmp.ne.s32.totalorder %s597_s1, %s805_s27  ;;  %p811_p10 = scmp.lt.s32.totalorder %s805_s27, %s805_s27 }
  0x19   :  { %743 = vmatprep.subr.bf16.mxu0 %v873_v11  ;;  %719 = vmatprep.subr.bf16.mxu1 %v873_v11  ;;  %v153_v19 = vand.u32 4294901760, %v152_v17  ;;  %v37_v40 = vand.u32 127, %v36_v39 }
  0x1a   :  { %745 = vmatpush3.bf16.msra.mxu0 %v873_v11  ;;  %721 = vmatpush3.bf16.msra.mxu1 %v873_v11  ;;  %v160_v20 = vand.u32 4294901760, %v159_v18  ;;  %v167_v28 = vand.u32 4294901760, %v166_v24  ;;  %v174_v29 = vand.u32 4294901760, %v173_v25  ;;  %v734_v37 = vpack.c.bf16 %v159_v18, %v152_v17  ;;  %p812_p11 = por %p811_p10, %p810_p9 }
  0x1b   :  { %747 = vmatprep.subr.bf16.mxu0 %v879_v16  ;;  %723 = vmatprep.subr.bf16.mxu1 %v879_v16  ;;  %v154_v22 = vsub.f32 %v152_v17, %v153_v19  ;;  %v738_v38 = vpack.c.bf16 %v173_v25, %v166_v24 }
  0x1c   :  { %42 = vperm.xlu0 %782, %v35_v10   ;;  %v750_v21 = vpack.c.bf16 %v160_v20, %v153_v19  ;;  %v161_v23 = vsub.f32 %v159_v18, %v160_v20  ;;  %v754_v31 = vpack.c.bf16 %v174_v29, %v167_v28  ;;  %v168_v32 = vsub.f32 %v166_v24, %v167_v28  ;;  %p813_p12 = pnand %p812_p11, %p806_p8 }
  0x1d   :  { %v155_v26 = vand.u32 4294901760, %v154_v22  ;;  %v175_v33 = vsub.f32 %v173_v25, %v174_v29 }
  0x1e   :  { %749 = vmatpush3.bf16.msra.mxu0 %v879_v16  ;;  %725 = vmatpush3.bf16.msra.mxu1 %v879_v16  ;;  %v162_v27 = vand.u32 4294901760, %v161_v23  ;;  %v169_v34 = vand.u32 4294901760, %v168_v32 }
  0x1f   :  { %751 = vmatprep.subr.bf16.mxu0 %v750_v21  ;;  %v176_v35 = vand.u32 4294901760, %v175_v33 }
  0x20   :  { %v726_v30 = vpack.c.bf16 %v162_v27, %v155_v26 }
  0x21   :  { %v730_v36 = vpack.c.bf16 %v176_v35, %v169_v34 }
  0x22   :  { %727 = vmatprep.subr.bf16.mxu1 %v726_v30 }
  0x97   :  { %v40_v41 = vpop.permute.xlu0 %39 }
  0x98   :  { %vm44_vm5 = vcmp.eq.s32.totalorder %v37_v40, %v40_v41 }
  0x99   :  { %v608_v43 = vsel %vm44_vm5, 1.0, %v835_v42 }
  0x9a   :  { %v56_v44 = vsel %vm54_vm4, %v608_v43, 0 }
  0x9b   :  { %v131_v45 = vsub.f32 %v56_v44, %v56_v44  ;;  %v43_v46 = vpop.permute.xlu0 %42 }
  0x9c   :  { %vm45_vm6 = vcmp.eq.s32.totalorder %v37_v40, %v43_v46 }
  0x9d   :  { %v609_v47 = vsel %vm45_vm6, 1.0, %v835_v42  ;;  %v132_v48 = vand.u32 4294901760, %v131_v45 }
  0x9e   :  { %v59_v49 = vsel %vm54_vm4, %v609_v47, 0 }
  0x9f   :  { %v141_v50 = vsub.f32 %v59_v49, %v59_v49  ;;  %693 = vmatprep.mubr.f32.mxu0 %v132_v48  ;;  %v133_v51 = vsub.f32 %v131_v45, %v132_v48 }
  0xa1   :  { %v134_v52 = vand.u32 4294901760, %v133_v51  ;;  %v142_v53 = vand.u32 4294901760, %v141_v50 }
  0xa3   :  { %660 = vmatprep.mubr.f32.mxu1 %v134_v52  ;;  %694 = vmatmul.mubr.f32.vlgmr.msra.gmra.mrb[0].mxu0 %v142_v53  ;;  %v143_v54 = vsub.f32 %v141_v50, %v142_v53 }
  0xa4   :  { %753 = vmatpush3.bf16.msra.mxu0 %v750_v21  ;;  %704 = vmatprep.mubr.msk.f32.mxu0 %vm54_vm4, %v608_v43 }
  0xa5   :  { %v144_v55 = vand.u32 4294901760, %v143_v54  ;;  %755 = vmatprep.subr.bf16.mxu0 %v754_v31 }
  0xa7   :  { %661 = vmatmul.mubr.f32.vlgmr.msra.gmra.mrb[0].mxu1 %v144_v55 }
  0xa8   :  { %729 = vmatpush3.bf16.msra.mxu1 %v726_v30  ;;  %671 = vmatprep.mubr.msk.f32.mxu1 %vm54_vm4, %v608_v43 }
  0xa9   :  { %757 = vmatpush3.bf16.msra.mxu0 %v754_v31  ;;  %731 = vmatprep.subr.bf16.mxu1 %v730_v36 }
  0xaa   :  { %759 = vmatprep.subr.bf16.mxu0 %v873_v11 }
  0xac   :  { %733 = vmatpush3.bf16.msra.mxu1 %v730_v36  ;;  %705 = vmatmul.mubr.msk.f32.vlgmr.msra.gmra.mrb[0].mxu0 %vm54_vm4, %v609_v47 }
  0xad   :  { %761 = vmatpush3.bf16.msra.mxu0 %v873_v11  ;;  %715 = vmatprep.mubr.msk.f32.mxu0 %vm54_vm4, %v608_v43 }
  0xae   :  { %735 = vmatprep.subr.bf16.mxu1 %v734_v37  ;;  %763 = vmatprep.subr.bf16.mxu0 %v879_v16 }
  0xaf   :  { %672 = vmatmul.mubr.msk.f32.vlgmr.msra.gmra.mrb[0].mxu1 %vm54_vm4, %v609_v47 }
  0xb0   :  { %737 = vmatpush3.bf16.msra.mxu1 %v734_v37  ;;  %682 = vmatprep.mubr.f32.mxu1 %v131_v45 }
  0xb1   :  { %765 = vmatpush3.bf16.msra.mxu0 %v879_v16  ;;  %739 = vmatprep.subr.bf16.mxu1 %v738_v38 }
  0xb4   :  { %741 = vmatpush3.bf16.msra.mxu1 %v738_v38  ;;  %716 = vmatmul.mubr.msk.f32.vlgmr.msra.gmra.mrb[0].mxu0 %vm54_vm4, %v609_v47 }
  0xb7   :  { %683 = vmatmul.mubr.f32.vlgmr.msra.gmra.mrb[0].mxu1 %v141_v50 }
 0x187   :  { %v717_v56 = vpop.f32.mrb[0].mxu0 }
 0x188   :  { %v579_v57 = vpop.f32.mrb[1].mxu0 }
 0x18a   :  { %v684_v58 = vpop.f32.mrb[0].mxu1 }
 0x18b   :  { %v766_v59 = vadd.f32 %v717_v56, %v684_v58  ;;  %v323_v60 = vpop.f32.mrb[1].mxu1 }
 0x18c   :  { %v767_v61 = vadd.f32 %v579_v57, %v323_v60 }
 0x18d   :  { %590 = vst [vmem:[#allocation5 + $0x8] sm:$0xff] %v766_v59 }
 0x18e   :  { %589 = vst [vmem:[#allocation5] sm:$0xff] %v767_v61 }
 0x18f   :  { %816 = shalt.err (!%p813_p12)
}
 0x190   :  { %s817_s30 = scalar_lea.hbm %s914_s2, 256 }
 0x191   :  { %p818_p13 = scmp.ne.s32.totalorder %s914_s2, %s817_s30  ;;  %p821_p0 = scmp.lt.u32.totalorder %s817_s30, %s914_s2 }
 0x193   :  { %p823_p1 = pnand %p821_p0, %p818_p13 }
 0x195   :  { %826 = shalt.err (!%p823_p1)
}
 0x196   :  { %602 = dma.vmem_to_hbm [thread:$0]  %s597_s1, 256, %s914_s2, [#allocation4], %s832_s19, %s832_s19, %s833_s20  }
 0x197   :  { %829 = dma.done.wait [#allocation4], 256  }
 0x198   :  { %830 = vsyncadd [#allocation4], 4294967040 }
 0x199   :  { %606 = vsyncpa [#allocation3], 1 }
 0x19a   :  { %607 = vsyncpa [#allocation4], 1 }

// kernel: tpu_custom_call.1
= control target key start
LH: loop header
LB: loop body
LE: loop exit
PB: predicated region body
PF: predicated region fallthrough
CT: control target
= control target key end

     0   :  { %7 = vsyncpa [#allocation3], 0  ;;  %s912_s0 = inlined_call_operand.vmem [shape: s32[16,1], index: 0, kind: input, shape index: {}]   ;;  %s913_s1 = inlined_call_operand.hbm [shape: f32[32,128], index: 1, kind: input, shape index: {}]   ;;  %s914_s2 = inlined_call_operand.hbm [shape: f32[16,128], index: 2, kind: output, shape index: {}]  }
   0x1   :  { %8 = vsyncpa [#allocation4], 0  ;;  %s831_s9 = smov [#allocation2]   ;;  %s783_s13 = scalar_lea.hbm %s913_s1, 512 }
   0x2   :  { %s16_s10 = sshll.u32 %s831_s9, 4  ;;  %p784_p0 = scmp.ne.s32.totalorder %s913_s1, %s783_s13  ;;  %s17_s10 = int_to_ptr.vmem [resolvable:$true] %s16_s10 }
   0x3   :  { %p787_p1 = scmp.lt.u32.totalorder %s783_s13, %s913_s1 }
   0x5   :  { %p789_p2 = pnand %p787_p1, %p784_p0 }
   0x7   :  { %792 = shalt.err (!%p789_p2)
}
   0x8   :  { %s793_s18 = scalar_lea.vmem %s17_s10, 512  ;;  %p798_p4 = scmp.lt.s32.totalorder %s17_s10, %s17_s10 }
   0x9   :  { %p794_p3 = scmp.ne.s32.totalorder %s17_s10, %s793_s18  ;;  %p799_p5 = scmp.lt.s32.totalorder %s793_s18, %s793_s18 }
   0xb   :  { %p800_p6 = por %p799_p5, %p798_p4 }
   0xd   :  { %p801_p7 = pnand %p800_p6, %p794_p3 }
   0xf   :  { %804 = shalt.err (!%p801_p7)
}
  0x10   :  { %s832_s19 = smov 128   ;;  %s833_s20 = smov 8  }
  0x11   :  { %22 = dma.hbm_to_vmem [thread:$0]  %s913_s1, 512, %s17_s10, [#allocation3], %s832_s19, %s832_s19, %s833_s20  }
  0x12   :  { %827 = dma.done.wait [#allocation3], 512  }
  0x13   :  { %828 = vsyncadd [#allocation3], 4294966784  ;;  %v834_v0 = vmov 0   ;;  %v26_v1 = vld [vmem:[%s912_s0] sm:$0xff]  ;;  %v27_v2 = vld [vmem:[%s912_s0 + $0x8] sm:$0xff]  ;;  %v36_v39 = vlaneseq  ;;  %vm54_vm4 = vcmask 261120  }
  0x14   :  { %782 = vset.pattern.permute.xlu0 %v834_v0  ;;  %vm28_vm0 = vcmp.gt.s32.totalorder %v26_v1, 0  ;;  %vm30_vm1 = vcmp.gt.s32.totalorder %v27_v2, 0  ;;  %v50_v5 = vld [vmem:[#allocation2] sm:$0xff]  ;;  %v51_v6 = vld [vmem:[#allocation2 + $0x8] sm:$0xff]  ;;  %v52_v12 = vld [vmem:[#allocation2 + $0x10] sm:$0xff]  ;;  %v835_v42 = vmov 0.0  }
  0x15   :  { %v29_v3 = vsel %vm28_vm0, %v26_v1, 0  ;;  %v31_v4 = vsel %vm30_vm1, %v27_v2, 0  ;;  %v62_v8 = vand.u32 4294901760, %v50_v5  ;;  %v65_v9 = vand.u32 4294901760, %v51_v6  ;;  %v53_v13 = vld [vmem:[#allocation2 + $0x18] sm:$0xff]  ;;  %s836_s0 = smov [#allocation5]  }
  0x16   :  { %vm32_vm2 = vcmp.lt.s32.totalorder %v29_v3, 31  ;;  %vm34_vm3 = vcmp.lt.s32.totalorder %v31_v4, 31  ;;  %v68_v14 = vand.u32 4294901760, %v52_v12  ;;  %v71_v15 = vand.u32 4294901760, %v53_v13  ;;  %s596_s1 = sshll.u32 %s836_s0, 4  ;;  %s597_s1 = int_to_ptr.vmem [resolvable:$true] %s596_s1 }
  0x17   :  { %v33_v7 = vsel %vm32_vm2, %v29_v3, 31  ;;  %v35_v10 = vsel %vm34_vm3, %v31_v4, 31  ;;  %v873_v11 = vpack.c.bf16 %v65_v9, %v62_v8  ;;  %v152_v17 = vsub.f32 %v50_v5, %v62_v8  ;;  %s805_s27 = scalar_lea.vmem %s597_s1, 256  ;;  %p810_p9 = scmp.lt.s32.totalorder %s597_s1, %s597_s1 }
  0x18   :  { %39 = vperm.xlu0 %782, %v33_v7   ;;  %v879_v16 = vpack.c.bf16 %v71_v15, %v68_v14  ;;  %v159_v18 = vsub.f32 %v51_v6, %v65_v9  ;;  %v166_v24 = vsub.f32 %v52_v12, %v68_v14  ;;  %v173_v25 = vsub.f32 %v53_v13, %v71_v15  ;;  %p806_p8 = scmp.ne.s32.totalorder %s597_s1, %s805_s27  ;;  %p811_p10 = scmp.lt.s32.totalorder %s805_s27, %s805_s27 }
  0x19   :  { %743 = vmatprep.subr.bf16.mxu0 %v873_v11  ;;  %719 = vmatprep.subr.bf16.mxu1 %v873_v11  ;;  %v153_v19 = vand.u32 4294901760, %v152_v17  ;;  %v37_v40 = vand.u32 127, %v36_v39 }
  0x1a   :  { %745 = vmatpush3.bf16.msra.mxu0 %v873_v11  ;;  %721 = vmatpush3.bf16.msra.mxu1 %v873_v11  ;;  %v160_v20 = vand.u32 4294901760, %v159_v18  ;;  %v167_v28 = vand.u32 4294901760, %v166_v24  ;;  %v174_v29 = vand.u32 4294901760, %v173_v25  ;;  %v734_v37 = vpack.c.bf16 %v159_v18, %v152_v17  ;;  %p812_p11 = por %p811_p10, %p810_p9 }
  0x1b   :  { %747 = vmatprep.subr.bf16.mxu0 %v879_v16  ;;  %723 = vmatprep.subr.bf16.mxu1 %v879_v16  ;;  %v154_v22 = vsub.f32 %v152_v17, %v153_v19  ;;  %v738_v38 = vpack.c.bf16 %v173_v25, %v166_v24 }
  0x1c   :  { %42 = vperm.xlu0 %782, %v35_v10   ;;  %v750_v21 = vpack.c.bf16 %v160_v20, %v153_v19  ;;  %v161_v23 = vsub.f32 %v159_v18, %v160_v20  ;;  %v754_v31 = vpack.c.bf16 %v174_v29, %v167_v28  ;;  %v168_v32 = vsub.f32 %v166_v24, %v167_v28  ;;  %p813_p12 = pnand %p812_p11, %p806_p8 }
  0x1d   :  { %v155_v26 = vand.u32 4294901760, %v154_v22  ;;  %v175_v33 = vsub.f32 %v173_v25, %v174_v29 }
  0x1e   :  { %749 = vmatpush3.bf16.msra.mxu0 %v879_v16  ;;  %725 = vmatpush3.bf16.msra.mxu1 %v879_v16  ;;  %v162_v27 = vand.u32 4294901760, %v161_v23  ;;  %v169_v34 = vand.u32 4294901760, %v168_v32 }
  0x1f   :  { %751 = vmatprep.subr.bf16.mxu0 %v750_v21  ;;  %v176_v35 = vand.u32 4294901760, %v175_v33 }
  0x20   :  { %v726_v30 = vpack.c.bf16 %v162_v27, %v155_v26 }
  0x21   :  { %v730_v36 = vpack.c.bf16 %v176_v35, %v169_v34 }
  0x22   :  { %727 = vmatprep.subr.bf16.mxu1 %v726_v30 }
  0x97   :  { %v40_v41 = vpop.permute.xlu0 %39 }
  0x98   :  { %vm44_vm5 = vcmp.eq.s32.totalorder %v37_v40, %v40_v41 }
  0x99   :  { %v608_v43 = vsel %vm44_vm5, 1.0, %v835_v42 }
  0x9a   :  { %v56_v44 = vsel %vm54_vm4, %v608_v43, 0 }
  0x9b   :  { %v131_v45 = vsub.f32 %v56_v44, %v56_v44  ;;  %v43_v46 = vpop.permute.xlu0 %42 }
  0x9c   :  { %vm45_vm6 = vcmp.eq.s32.totalorder %v37_v40, %v43_v46 }
  0x9d   :  { %v609_v47 = vsel %vm45_vm6, 1.0, %v835_v42  ;;  %v132_v48 = vand.u32 4294901760, %v131_v45 }
  0x9e   :  { %v59_v49 = vsel %vm54_vm4, %v609_v47, 0 }
  0x9f   :  { %v141_v50 = vsub.f32 %v59_v49, %v59_v49  ;;  %693 = vmatprep.mubr.f32.mxu0 %v132_v48  ;;  %v133_v51 = vsub.f32 %v131_v45, %v132_v48 }
  0xa1   :  { %v134_v52 = vand.u32 4294901760, %v133_v51  ;;  %v142_v53 = vand.u32 4294901760, %v141_v50 }
  0xa3   :  { %660 = vmatprep.mubr.f32.mxu1 %v134_v52  ;;  %694 = vmatmul.mubr.f32.vlgmr.msra.gmra.mrb[0].mxu0 %v142_v53  ;;  %v143_v54 = vsub.f32 %v141_v50, %v142_v53 }
  0xa4   :  { %753 = vmatpush3.bf16.msra.mxu0 %v750_v21  ;;  %704 = vmatprep.mubr.msk.f32.mxu0 %vm54_vm4, %v608_v43 }
  0xa5   :  { %v144_v55 = vand.u32 4294901760, %v143_v54  ;;  %755 = vmatprep.subr.bf16.mxu0 %v754_v31 }
  0xa7   :  { %661 = vmatmul.mubr.f32.vlgmr.msra.gmra.mrb[0].mxu1 %v144_v55 }
  0xa8   :  { %729 = vmatpush3.bf16.msra.mxu1 %v726_v30  ;;  %671 = vmatprep.mubr.msk.f32.mxu1 %vm54_vm4, %v608_v43 }
  0xa9   :  { %757 = vmatpush3.bf16.msra.mxu0 %v754_v31  ;;  %731 = vmatprep.subr.bf16.mxu1 %v730_v36 }
  0xaa   :  { %759 = vmatprep.subr.bf16.mxu0 %v873_v11 }
  0xac   :  { %733 = vmatpush3.bf16.msra.mxu1 %v730_v36  ;;  %705 = vmatmul.mubr.msk.f32.vlgmr.msra.gmra.mrb[0].mxu0 %vm54_vm4, %v609_v47 }
  0xad   :  { %761 = vmatpush3.bf16.msra.mxu0 %v873_v11  ;;  %715 = vmatprep.mubr.msk.f32.mxu0 %vm54_vm4, %v608_v43 }
  0xae   :  { %735 = vmatprep.subr.bf16.mxu1 %v734_v37  ;;  %763 = vmatprep.subr.bf16.mxu0 %v879_v16 }
  0xaf   :  { %672 = vmatmul.mubr.msk.f32.vlgmr.msra.gmra.mrb[0].mxu1 %vm54_vm4, %v609_v47 }
  0xb0   :  { %737 = vmatpush3.bf16.msra.mxu1 %v734_v37  ;;  %682 = vmatprep.mubr.f32.mxu1 %v131_v45 }
  0xb1   :  { %765 = vmatpush3.bf16.msra.mxu0 %v879_v16  ;;  %739 = vmatprep.subr.bf16.mxu1 %v738_v38 }
  0xb4   :  { %741 = vmatpush3.bf16.msra.mxu1 %v738_v38  ;;  %716 = vmatmul.mubr.msk.f32.vlgmr.msra.gmra.mrb[0].mxu0 %vm54_vm4, %v609_v47 }
  0xb7   :  { %683 = vmatmul.mubr.f32.vlgmr.msra.gmra.mrb[0].mxu1 %v141_v50 }
 0x187   :  { %v717_v56 = vpop.f32.mrb[0].mxu0 }
 0x188   :  { %v579_v57 = vpop.f32.mrb[1].mxu0 }
 0x18a   :  { %v684_v58 = vpop.f32.mrb[0].mxu1 }
 0x18b   :  { %v766_v59 = vadd.f32 %v717_v56, %v684_v58  ;;  %v323_v60 = vpop.f32.mrb[1].mxu1 }
 0x18c   :  { %v767_v61 = vadd.f32 %v579_v57, %v323_v60 }
 0x18d   :  { %590 = vst [vmem:[#allocation5 + $0x8] sm:$0xff] %v766_v59 }
 0x18e   :  { %589 = vst [vmem:[#allocation5] sm:$0xff] %v767_v61 }
 0x18f   :  { %816 = shalt.err (!%p813_p12)
}
 0x190   :  { %s817_s30 = scalar_lea.hbm %s914_s2, 256 }
 0x191   :  { %p818_p13 = scmp.ne.s32.totalorder %s914_s2, %s817_s30  ;;  %p821_p0 = scmp.lt.u32.totalorder %s817_s30, %s914_s2 }
 0x193   :  { %p823_p1 = pnand %p821_p0, %p818_p13 }
 0x195   :  { %826 = shalt.err (!%p823_p1)
}
 0x196   :  { %602 = dma.vmem_to_hbm [thread:$0]  %s597_s1, 256, %s914_s2, [#allocation4], %s832_s19, %s832_s19, %s833_s20  }
 0x197   :  { %829 = dma.done.wait [#allocation4], 256  }
 0x198   :  { %830 = vsyncadd [#allocation4], 4294967040 }
 0x199   :  { %606 = vsyncpa [#allocation3], 1 }
 0x19a   :  { %607 = vsyncpa [#allocation4], 1 }

</bundles_post_ra>
